<compile_context>
chip_gen: v6e
topology: v6e:2x2x1
jax: 0.10.0
libtpu: 0.0.40
codegen_flags: <defaults>
</compile_context>

<pallas_src>
import functools

import jax
import jax.numpy as jnp
from jax import lax
from jax.experimental import pallas as pl
from jax.experimental.pallas import tpu as pltpu

_LANE = 128
_SUBLANE = 8
_MAX_TILE = 2048                 # upper bound on output rows per grid step
_OUT_TILE_BYTES = 2 << 20        # target out-tile footprint (~2 MiB)
_ONEHOT_BYTES = 256 << 10        # cap on the (tile, V) one-hot intermediate
_RESULT_BYTES = 512 << 10        # cap on the (tile, D_pad) matmul result value
_ONE_HOT_MAX_V = 1024            # one-hot MXU path only for small vocabularies
_ONE_HOT_MAX_D = 1024
_DMA_DEPTH = 8                   # outstanding row DMAs in the HBM-gather path


def _round_up(x, m):
    return (x + m - 1) // m * m


def _vmem_capacity_bytes():
    try:
        cap = int(getattr(pltpu.get_tpu_info(), "vmem_capacity_bytes", 0))
        if cap > 0:
            return cap
    except Exception:
        pass
    return 64 << 20  # conservative default (v7x per-TC VMEM)


def _choose_tile(n, constraints):
    """Largest sublane-multiple tile satisfying per-row byte budgets."""
    cap = _MAX_TILE
    for per_row_bytes, budget_bytes in constraints:
        if per_row_bytes > 0:
            cap = min(cap, budget_bytes // per_row_bytes)
    cap = max(_SUBLANE, (cap // _SUBLANE) * _SUBLANE)
    if n <= cap:
        return _round_up(max(n, 1), _SUBLANE)
    return cap


# ------------------------- one-hot MXU gather path -------------------------
def _gather_onehot_kernel(idx_ref, w_ref, out_ref):
    """idx_ref: VMEM (tile, 1) int32; w_ref: VMEM (V, D_pad); out: (tile, D_pad).

    Vectorized gather: out = onehot(idx) @ W on the MXU.  No per-row loop, no
    scalar dependency chain; the VPU only builds the one-hot mask.
    """
    idx = idx_ref[...]                                    # (tile, 1) int32
    tile = out_ref.shape[0]
    v = w_ref.shape[0]
    onehot = (lax.broadcasted_iota(jnp.int32, (tile, v), 1) == idx)
    onehot = onehot.astype(w_ref.dtype)                   # (tile, V)
    out_ref[...] = jnp.dot(
        onehot, w_ref[...], preferred_element_type=jnp.float32
    ).astype(out_ref.dtype)


# ------------------- VMEM-resident row-loop fallback path -------------------
def _gather_loop_kernel(idx_ref, w_ref, out_ref):
    """idx_ref: SMEM (tile,) int32; w_ref: VMEM (V, D_pad); out: (tile, D_pad)."""
    tile = out_ref.shape[0]

    def body(j, carry):
        row = idx_ref[j]                 # scalar read from SMEM
        out_ref[j, :] = w_ref[row, :]    # dynamic row load -> dynamic row store
        return carry

    lax.fori_loop(0, tile, body, None, unroll=8)
    # TODO(synk): for sub-32-bit weights (bf16) on v5e, gather rows in pairs and
    # pltpu.bitcast to u32 so stores stay full-sublane (v5e has 1 vst slot).


# -------------------- HBM deep-pipelined DMA gather path --------------------
def _gather_hbm_kernel(idx_ref, w_hbm, out_ref, sem):
    """idx_ref: SMEM (tile,) int32; w_hbm: raw HBM ref (V, D_pad);
    out_ref: VMEM (tile, D_pad); sem: DMA semaphore ring (_DMA_DEPTH,).

    Each row is DMA'd directly from HBM into its out_ref row (no VMEM staging
    copy) with up to _DMA_DEPTH row DMAs in flight to hide HBM latency.
    """
    tile = out_ref.shape[0]

    def row_copy(j, row):
        # Same descriptor is used for start() and wait() of a given j.
        return pltpu.make_async_copy(
            w_hbm.at[pl.ds(row, 1), :],
            out_ref.at[pl.ds(j, 1), :],
            sem.at[j & (_DMA_DEPTH - 1)])

    # Prime the pipeline: issue the first min(DEPTH, tile) row DMAs.
    for j in range(min(_DMA_DEPTH, tile)):
        row_copy(j, idx_ref[j]).start()

    def body(j, carry):
        # Hoist SMEM index reads before the wait (.wait() breaks sst->sld fwd).
        row_j = idx_ref[j]
        nj = j + _DMA_DEPTH
        row_next = idx_ref[jnp.minimum(nj, tile - 1)]

        row_copy(j, row_j).wait()

        @pl.when(nj < tile)
        def _():
            row_copy(nj, row_next).start()

        return carry

    lax.fori_loop(0, tile, body, None)


# --------------------------------- wrapper ---------------------------------
def poincare_embedding_lookup(indices, weight, *, force_path=None):
    """Equivalent of F.embedding(indices, weight, padding_idx, max_norm=None).

    With max_norm=None the forward pass is a pure row gather; padding_idx only
    affects initialization (zero row) and gradients, both handled outside.
    Note: out-of-range indices are clamped to [0, V) (PyTorch would raise).
    """
    orig_shape = indices.shape
    V, D = weight.shape
    itemsize = jnp.dtype(weight.dtype).itemsize

    # Lane-dense output stores: pad embedding dim to a multiple of 128.
    D_pad = _round_up(D, _LANE)
    w = weight if D_pad == D else jnp.pad(weight, ((0, 0), (0, D_pad - D)))

    flat = jnp.clip(indices.reshape(-1).astype(jnp.int32), 0, V - 1)
    n = int(flat.shape[0])
    if n == 0:
        return jnp.zeros((*orig_shape, D), weight.dtype)

    vmem_cap = _vmem_capacity_bytes()
    hard_cap = max(vmem_cap - (4 << 20), 32 << 20)
    # Generation-aware resident-table threshold: ~44 MiB on 128 MiB VMEM parts
    # (v5e/v6e), ~14 MiB on 64 MiB parts (v7x; 'parallel' grid -> table lives
    # in each TC's VMEM).  The pipeline keeps 2 buffers of the invariant block.
    resident_thr = (44 << 20) if vmem_cap >= (96 << 20) else (14 << 20)
    weight_bytes = V * D_pad * itemsize
    headroom = 8 << 20

    if force_path is not None:
        path = force_path
    elif weight_bytes > resident_thr:
        path = "hbm"
    elif V <= _ONE_HOT_MAX_V and D_pad <= _ONE_HOT_MAX_D:
        path = "onehot"
    else:
        path = "loop"

    # Tile selection: amortize the ~0.35 us/grid-step overhead with big tiles,
    # bounded by out-tile bytes (and by one-hot / result live-value bytes).
    if path == "onehot":
        tile = _choose_tile(n, [(D_pad * itemsize, _OUT_TILE_BYTES),
                                (V * itemsize, _ONEHOT_BYTES),
                                (D_pad * itemsize, _RESULT_BYTES)])
    else:
        tile = _choose_tile(n, [(D_pad * itemsize, _OUT_TILE_BYTES)])

    n_pad = _round_up(n, tile)
    if n_pad != n:
        flat = jnp.pad(flat, (0, n_pad - n))  # padded lookups hit row 0
    grid = (n_pad // tile,)
    out_tile_bytes = tile * D_pad * itemsize

    out_spec = pl.BlockSpec((tile, D_pad), lambda i: (i, 0))

    if path == "onehot":
        idx_arr = flat[:, None]                          # (n_pad, 1) lane-dense
        in_specs = [pl.BlockSpec((tile, 1), lambda i: (i, 0)),
                    pl.BlockSpec((V, D_pad), lambda i: (0, 0))]
        kernel = _gather_onehot_kernel
        scratch_shapes = []
        onehot_bytes = tile * V * itemsize
        vmem_limit = (2 * weight_bytes + 2 * out_tile_bytes
                      + 2 * onehot_bytes + headroom)
    elif path == "loop":
        idx_arr = flat
        in_specs = [pl.BlockSpec((tile,), lambda i: (i,),
                                 memory_space=pltpu.MemorySpace.SMEM),
                    pl.BlockSpec((V, D_pad), lambda i: (0, 0))]
        kernel = _gather_loop_kernel
        scratch_shapes = []
        vmem_limit = 2 * weight_bytes + 2 * out_tile_bytes + headroom
    elif path == "hbm":
        idx_arr = flat
        in_specs = [pl.BlockSpec((tile,), lambda i: (i,),
                                 memory_space=pltpu.MemorySpace.SMEM),
                    pl.BlockSpec(memory_space=pl.ANY)]   # weight stays in HBM
        kernel = _gather_hbm_kernel
        scratch_shapes = [pltpu.SemaphoreType.DMA((_DMA_DEPTH,))]
        vmem_limit = 2 * out_tile_bytes + headroom
    else:
        raise ValueError(f"unknown path {path!r}")

    vmem_limit = int(min(max(vmem_limit, 32 << 20), hard_cap))

    out = pl.pallas_call(
        kernel,
        out_shape=jax.ShapeDtypeStruct((n_pad, D_pad), w.dtype),
        grid=grid,
        in_specs=in_specs,
        out_specs=out_spec,
        scratch_shapes=scratch_shapes,
        compiler_params=pltpu.CompilerParams(
            dimension_semantics=("parallel",),   # independent tiles -> 2 TCs on v7x
            vmem_limit_bytes=vmem_limit),
    )(idx_arr, w)

    out = out[:n, :D]
    return out.reshape(*orig_shape, D)


# ------------------------- reference initialization -------------------------
def init_poincare_weight(key, num_embeddings, embedding_dim,
                         c=1.0, init_std=0.01, padding_idx=None):
    """Deterministic re-implementation of PoincareEmbedding.reset_parameters().

    direction ~ N(0,1), normalized; distance ~ N(0, init_std / sqrt(c));
    weight = expmap0(direction * distance) on the Poincare ball of curvature c;
    padding_idx row zeroed.
    """
    k1, k2 = jax.random.split(key)
    direction = jax.random.normal(k1, (num_embeddings, embedding_dim),
                                  jnp.float32)
    direction = direction / jnp.clip(
        jnp.linalg.norm(direction, axis=-1, keepdims=True), 1e-7)
    distance = jax.random.normal(k2, (num_embeddings, 1), jnp.float32) * (
        init_std / jnp.sqrt(c))
    u = direction * distance
    # Poincare-ball expmap0(u) = tanh(sqrt(c) * ||u||) * u / (sqrt(c) * ||u||)
    sqrt_c = jnp.sqrt(jnp.asarray(c, jnp.float32))
    norm_u = jnp.clip(jnp.linalg.norm(u, axis=-1, keepdims=True), 1e-15)
    w = jnp.tanh(sqrt_c * norm_u) * u / (sqrt_c * norm_u)
    if padding_idx is not None:
        w = w.at[padding_idx].set(0.0)
    return w


if __name__ == "__main__":
    num_embeddings = 64
    embedding_dim = 128
    padding_idx = 0
    batch, seq = 2, 8

    key = jax.random.PRNGKey(0)
    k_w, k_idx, k_w2, k_idx2 = jax.random.split(key, 4)

    weight = init_poincare_weight(
        k_w, num_embeddings, embedding_dim,
        c=1.0, init_std=0.01, padding_idx=padding_idx)

    # LongTensor-like input of arbitrary shape (*); include the padding index.
    indices = jax.random.randint(k_idx, (batch, seq), 0, num_embeddings,
                                 dtype=jnp.int32)
    indices = indices.at[0, 0].set(padding_idx)

    ref = jnp.take(weight, indices.reshape(-1), axis=0).reshape(
        batch, seq, embedding_dim)

    # 1) Default path: small vocab -> one-hot MXU gather, VMEM-resident table.
    out = jax.block_until_ready(poincare_embedding_lookup(indices, weight))
    assert out.shape == (batch, seq, embedding_dim)
    assert jnp.allclose(out, ref, atol=1e-6), "one-hot MXU gather mismatch"
    assert jnp.allclose(out[0, 0], 0.0, atol=1e-7), "padding_idx row not zero"

    # 2) Forced row-loop path (medium-V VMEM-resident fallback).
    out_loop = jax.block_until_ready(
        poincare_embedding_lookup(indices, weight, force_path="loop"))
    assert jnp.allclose(out_loop, ref), "row-loop gather mismatch"

    # 3) Forced HBM deep-pipelined DMA gather (auto-selected for big tables).
    out_hbm = jax.block_until_ready(
        poincare_embedding_lookup(indices, weight, force_path="hbm"))
    assert jnp.allclose(out_hbm, ref), "HBM DMA gather mismatch"

    # 4) Ragged index count + non-aligned (V, D): exercises D padding to 128,
    #    V not a multiple of 8/128, and the padded-rows path.
    V2, D2 = 40, 100
    w2 = jax.random.normal(k_w2, (V2, D2), jnp.float32) * 0.02
    idx2 = jax.random.randint(k_idx2, (3, 5), 0, V2, dtype=jnp.int32)
    ref2 = jnp.take(w2, idx2.reshape(-1), axis=0).reshape(3, 5, D2)
    out2 = jax.block_until_ready(poincare_embedding_lookup(idx2, w2))
    assert jnp.allclose(out2, ref2, atol=1e-6), "padded/ragged gather mismatch"

    print("KERNEL_OK")
</pallas_src>

<mosaic_0001>
module attributes {stable_mosaic.version = 11 : i64} {
  func.func @_gather_onehot_kernel(%arg0: i32, %arg1: memref<16x1xi32, #tpu.memory_space<vmem>>, %arg2: memref<64x128xf32, #tpu.memory_space<vmem>>, %arg3: memref<16x128xf32, #tpu.memory_space<vmem>>) attributes {dimension_semantics = [#tpu.dimension_semantics<parallel>], iteration_bounds = array<i64: 1>, scalar_prefetch = 0 : i64, scratch_operands = 0 : i64, tpu.core_type = #tpu.core_type<tc>, window_params = [{transform_indices = @transform_0, window_bounds = array<i64: 16, 1>}, {pipeline_mode = #tpu.pipeline_mode<synchronous>, transform_indices = @transform_1, window_bounds = array<i64: 64, 128>}, {transform_indices = @transform_2, window_bounds = array<i64: 16, 128>}]} {
    %c0 = arith.constant 0 : index
    %c0_0 = arith.constant 0 : index
    %0 = vector.load %arg1[%c0, %c0_0] : memref<16x1xi32, #tpu.memory_space<vmem>>, vector<16x1xi32>
    %1 = tpu.iota {dimensions = array<i32: 1>} : vector<16x64xi32>
    %2 = vector.broadcast %0 : vector<16x1xi32> to vector<16x64xi32>
    %3 = arith.cmpi eq, %1, %2 : vector<16x64xi32>
    %4 = arith.extui %3 : vector<16x64xi1> to vector<16x64xi32>
    %5 = arith.sitofp %4 : vector<16x64xi32> to vector<16x64xf32>
    %c0_1 = arith.constant 0 : index
    %c0_2 = arith.constant 0 : index
    %6 = vector.load %arg2[%c0_1, %c0_2] : memref<64x128xf32, #tpu.memory_space<vmem>>, vector<64x128xf32>
    %cst = arith.constant dense<0.000000e+00> : vector<16x128xf32>
    %7 = tpu.matmul %5, %6, %cst {dimension_numbers = #tpu.dot_dimension_numbers<[1], [0], [0], [1], [0, 0, 1, 1], [], []>} : vector<16x64xf32>, vector<64x128xf32>, vector<16x128xf32> -> vector<16x128xf32>
    %c0_3 = arith.constant 0 : index
    %c0_4 = arith.constant 0 : index
    %8 = vector.load %arg3[%c0_3, %c0_4] : memref<16x128xf32, #tpu.memory_space<vmem>>, vector<16x128xf32>
    tpu.vector_store %arg3[%c0_3, %c0_4], %7 {strides = array<i32>} : memref<16x128xf32, #tpu.memory_space<vmem>>, vector<16x128xf32>,
    return
  }
  func.func @transform_0(%arg0: i32) -> (i32, i32) {
    %c0_i32 = arith.constant 0 : i32
    %c0_i32_0 = arith.constant 0 : i32
    return %arg0, %c0_i32 : i32, i32
  }
  func.func @transform_1(%arg0: i32) -> (i32, i32) {
    %c0_i32 = arith.constant 0 : i32
    %c0_i32_0 = arith.constant 0 : i32
    %c0_i32_1 = arith.constant 0 : i32
    return %c0_i32, %c0_i32_0 : i32, i32
  }
  func.func @transform_2(%arg0: i32) -> (i32, i32) {
    %c0_i32 = arith.constant 0 : i32
    %c0_i32_0 = arith.constant 0 : i32
    return %arg0, %c0_i32 : i32, i32
  }
}

</mosaic_0001>

<bundles_post_ra>
// kernel: tpu_custom_call.1
= control target key start
LH: loop header
LB: loop body
LE: loop exit
PB: predicated region body
PF: predicated region fallthrough
CT: control target
= control target key end

     0   :  { %7 = vsyncpa [#allocation3], 0  ;;  %s274_s0 = inlined_call_operand.vmem [shape: s32[16,1], index: 0, kind: input, shape index: {}]   ;;  %s275_s1 = inlined_call_operand.hbm [shape: f32[64,128], index: 1, kind: input, shape index: {}]   ;;  %s276_s2 = inlined_call_operand.hbm [shape: f32[16,128], index: 2, kind: output, shape index: {}]  }
   0x1   :  { %8 = vsyncpa [#allocation4], 0  ;;  %s235_s9 = smov [#allocation2]  }
   0x2   :  { %s16_s10 = sshll.u32 %s235_s9, 4  ;;  %s17_s10 = int_to_ptr.vmem [resolvable:$true] %s16_s10 }
   0x3   :  { %s199_s11 = scalar_lea.vmem %s17_s10, 1024  ;;  %p204_p1 = scmp.lt.s32.totalorder %s17_s10, %s17_s10 }
   0x4   :  { %p200_p0 = scmp.ne.s32.totalorder %s17_s10, %s199_s11  ;;  %p205_p2 = scmp.lt.s32.totalorder %s199_s11, %s199_s11 }
   0x6   :  { %p206_p3 = por %p205_p2, %p204_p1 }
   0x8   :  { %p207_p4 = pnand %p206_p3, %p200_p0 }
   0xa   :  { %210 = shalt.err (!%p207_p4)
}
   0xb   :  { %s236_s12 = smov 128   ;;  %s237_s13 = smov 8  }
   0xc   :  { %22 = dma.hbm_to_vmem [thread:$0]  %s275_s1, 1024, %s17_s10, [#allocation3], %s236_s12, %s236_s12, %s237_s13  }
   0xd   :  { %231 = dma.done.wait [#allocation3], 1024  }
   0xe   :  { %232 = vsyncadd [#allocation3], 4294966272  ;;  %v238_v0 = vmov 0   ;;  %v26_v1 = vld [vmem:[%s274_s0] sm:$0xff]  ;;  %v49_v2 = vld [vmem:[#allocation2 + $0x38] sm:$0xff]  ;;  %v28_v11 = vlaneseq  ;;  %vm50_vm0 = vcmask 523264  }
   0xf   :  { %190 = vset.pattern.permute.xlu0 %v238_v0  ;;  %165 = vmatprep.subr.mxu0 %v49_v2  ;;  %v48_v3 = vld [vmem:[#allocation2 + $0x30] sm:$0xff]  ;;  %v27_v4 = vld [vmem:[%s274_s0 + $0x8] sm:$0xff]  ;;  %v46_v6 = vld [vmem:[#allocation2 + $0x20] sm:$0xff]  ;;  %v239_v14 = vmov 0.0   ;;  %s240_s0 = smov [#allocation5]  }
  0x10   :  { %31 = vperm.xlu0 %190, %v26_v1   ;;  %166 = vmatpush3.msra.mxu0 %v49_v2  ;;  %v47_v5 = vld [vmem:[#allocation2 + $0x28] sm:$0xff]  ;;  %v45_v7 = vld [vmem:[#allocation2 + $0x18] sm:$0xff]  ;;  %v44_v8 = vld [vmem:[#allocation2 + $0x10] sm:$0xff]  ;;  %v29_v12 = vand.u32 127, %v28_v11  ;;  %s139_s1 = sshll.u32 %s240_s0, 4  ;;  %s140_s1 = int_to_ptr.vmem [resolvable:$true] %s139_s1 }
  0x11   :  { %167 = vmatprep.subr.mxu0 %v48_v3  ;;  %v43_v9 = vld [vmem:[#allocation2 + $0x8] sm:$0xff]  ;;  %v42_v10 = vld [vmem:[#allocation2] sm:$0xff]  ;;  %s211_s20 = scalar_lea.vmem %s140_s1, 256  ;;  %p216_p6 = scmp.lt.s32.totalorder %s140_s1, %s140_s1 }
  0x12   :  { %168 = vmatpush3.msra.mxu0 %v48_v3  ;;  %p212_p5 = scmp.ne.s32.totalorder %s140_s1, %s211_s20  ;;  %p217_p7 = scmp.lt.s32.totalorder %s211_s20, %s211_s20 }
  0x13   :  { %169 = vmatprep.subr.mxu0 %v47_v5 }
  0x14   :  { %34 = vperm.xlu0 %190, %v27_v4   ;;  %170 = vmatpush3.msra.mxu0 %v47_v5  ;;  %p218_p8 = por %p217_p7, %p216_p6 }
  0x15   :  { %171 = vmatprep.subr.mxu0 %v46_v6 }
  0x16   :  { %172 = vmatpush3.msra.mxu0 %v46_v6  ;;  %p219_p9 = pnand %p218_p8, %p212_p5 }
  0x17   :  { %173 = vmatprep.subr.mxu0 %v45_v7 }
  0x18   :  { %174 = vmatpush3.msra.mxu0 %v45_v7 }
  0x19   :  { %175 = vmatprep.subr.mxu0 %v44_v8 }
  0x1a   :  { %176 = vmatpush3.msra.mxu0 %v44_v8 }
  0x1b   :  { %177 = vmatprep.subr.mxu0 %v43_v9 }
  0x1c   :  { %178 = vmatpush3.msra.mxu0 %v43_v9 }
  0x1d   :  { %179 = vmatprep.subr.mxu0 %v42_v10 }
  0x1e   :  { %180 = vmatpush3.msra.mxu0 %v42_v10 }
  0x8b   :  { %v32_v13 = vpop.permute.xlu0 %31 }
  0x8c   :  { %vm36_vm1 = vcmp.eq.s32.totalorder %v29_v12, %v32_v13 }
  0x8d   :  { %v151_v15 = vsel %vm36_vm1, 1.0, %v239_v14 }
  0x8e   :  { %181 = vmatprep.mubr.msk.f32.mxu0 %vm50_vm0, %v151_v15 }
  0x8f   :  { %v35_v16 = vpop.permute.xlu0 %34 }
  0x90   :  { %vm37_vm2 = vcmp.eq.s32.totalorder %v29_v12, %v35_v16 }
  0x91   :  { %v152_v17 = vsel %vm37_vm2, 1.0, %v239_v14 }
  0x92   :  { %182 = vmatmul.mubr.msk.f32.vlgmr.msra.gmra.mxu0 %vm50_vm0, %v152_v17 }
 0x152   :  { %v183_v18 = vpop.f32.mrf.mxu0 }
 0x153   :  { %133 = vst [vmem:[#allocation5 + $0x8] sm:$0xff] %v183_v18 }
 0x154   :  { %v123_v19 = vpop.f32.mrf.mxu0 }
 0x155   :  { %132 = vst [vmem:[#allocation5] sm:$0xff] %v123_v19 }
 0x156   :  { %222 = shalt.err (!%p219_p9)
}
 0x157   :  { %145 = dma.vmem_to_hbm [thread:$0]  %s140_s1, 256, %s276_s2, [#allocation4], %s236_s12, %s236_s12, %s237_s13  }
 0x158   :  { %233 = dma.done.wait [#allocation4], 256  }
 0x159   :  { %234 = vsyncadd [#allocation4], 4294967040 }
 0x15a   :  { %149 = vsyncpa [#allocation3], 1 }
 0x15b   :  { %150 = vsyncpa [#allocation4], 1 }

</bundles_post_ra>
